<compile_context>
chip_gen: v6e
topology: v6e:2x2x1
jax: 0.10.0
libtpu: 0.0.40
codegen_flags: <defaults>
</compile_context>

<pallas_src>
import functools
import math

import jax
import jax.numpy as jnp
from jax import lax
from jax.experimental import pallas as pl
from jax.experimental.pallas import tpu as pltpu


# ----------------------------------------------------------------------------- helpers
def _round_up(v, m):
    return ((v + m - 1) // m) * m


def _pick_tile(dim, align, cap):
    """Largest multiple of `align`, <= cap, dividing round_up(dim, align)."""
    padded = _round_up(max(dim, 1), align)
    t = min(max(cap, align), padded)
    t = max((t // align) * align, align)
    while t > align and padded % t != 0:
        t -= align
    return t


# ----------------------------------------------------------------- kernel 1: noise fuse
def _fuse_weight_kernel(wmu_ref, wsig_ref, weps_ref, wt_ref, *, out_f, in_f, bn, bk):
    # Fuse in f32 (sigma_init ~ 0.017 noise would be lost if fused in bf16).
    w = (wmu_ref[...].astype(jnp.float32)
         + wsig_ref[...].astype(jnp.float32) * weps_ref[...].astype(jnp.float32))
    bn_in, bk_in = w.shape  # input block may be clamped to the (small) real dims

    # Zero ragged tail rows/cols (code only generated for unaligned shapes).
    if bn_in == bn and out_f % bn != 0:
        rows = lax.broadcasted_iota(jnp.int32, w.shape, 0) + pl.program_id(0) * bn
        w = jnp.where(rows < out_f, w, 0.0)
    if bk_in == bk and in_f % bk != 0:
        cols = lax.broadcasted_iota(jnp.int32, w.shape, 1) + pl.program_id(1) * bk
        w = jnp.where(cols < in_f, w, 0.0)

    wt = w.T.astype(wt_ref.dtype)                      # [bk_in, bn_in], one-time XLU pass
    if (bn_in, bk_in) == (bn, bk):
        wt_ref[...] = wt
    else:
        wt_ref[...] = jnp.zeros_like(wt_ref)           # zero padded frame (small dims only)
        wt_ref[:bk_in, :bn_in] = wt


def fuse_noisy_weight(weight_mu, weight_sigma, weight_epsilon, *,
                      compute_dtype=jnp.bfloat16, bn_cap=256, bk_cap=512):
    """One pass over the weight: returns padded, transposed noisy weight [Kp, Np]."""
    out_f, in_f = weight_mu.shape
    Np = _round_up(out_f, 128)
    Kp = _round_up(in_f, 128)
    bn = _pick_tile(out_f, 128, bn_cap)
    bk = _pick_tile(in_f, 128, bk_cap)
    bn_in = min(bn, out_f)          # full-dim block when the layer is smaller than a tile
    bk_in = min(bk, in_f)

    kernel = functools.partial(_fuse_weight_kernel, out_f=out_f, in_f=in_f, bn=bn, bk=bk)

    in_bytes = jnp.dtype(weight_mu.dtype).itemsize
    w_bytes = jnp.dtype(compute_dtype).itemsize
    est_vmem = 2 * (3 * bn_in * bk_in * 4 + bk * bn * w_bytes)
    cost = pl.CostEstimate(
        flops=int(2 * out_f * in_f), transcendentals=0,
        bytes_accessed=int(3 * out_f * in_f * in_bytes + Kp * Np * w_bytes))

    return pl.pallas_call(
        kernel,
        out_shape=jax.ShapeDtypeStruct((Kp, Np), compute_dtype),
        grid_spec=pltpu.PrefetchScalarGridSpec(
            num_scalar_prefetch=0,
            grid=(Np // bn, Kp // bk),
            in_specs=[pl.BlockSpec((bn_in, bk_in), lambda j, k: (j, k))
                      for _ in range(3)],
            out_specs=pl.BlockSpec((bk, bn), lambda j, k: (k, j)),
        ),
        compiler_params=pltpu.CompilerParams(
            dimension_semantics=("parallel", "parallel"),
            vmem_limit_bytes=int(min(max(2 * est_vmem + (4 << 20), 16 << 20), 64 << 20))),
        cost_estimate=cost,
    )(weight_mu, weight_sigma, weight_epsilon)


# ----------------------------------------------------------------- kernel 2: the matmul
def _noisy_matmul_kernel(x_ref, wt_ref, b_ref, o_ref, acc_ref):
    k = pl.program_id(2)

    @pl.when(k == 0)
    def _():
        acc_ref[...] = jnp.zeros_like(acc_ref)

    # Plain [tm,tk] x [tk,tn] on the MXU; operands already in compute dtype (bf16),
    # accumulation in f32.
    acc_ref[...] += jnp.dot(x_ref[...], wt_ref[...],
                            preferred_element_type=jnp.float32)

    @pl.when(k == pl.num_programs(2) - 1)
    def _():
        o_ref[...] = (acc_ref[...] + b_ref[...]).astype(o_ref.dtype)


def noisy_linear_matmul(x, w_t, bias, out_features, *,
                        compute_dtype=jnp.bfloat16, tm=512, tn=512, tk=1024):
    """y = x @ w_t + bias, with w_t the padded, transposed (fused) weight [Kp, Np]."""
    B, in_f = x.shape
    Kp, Np = w_t.shape
    out_f = out_features
    out_dtype = x.dtype

    tm = _pick_tile(B, 8, tm)
    tk = _pick_tile(Kp, 128, tk)
    Bp = _round_up(B, 8)                     # tm divides Bp by construction
    # v7x megacore: when batch fits one M tile, make the N axis at least 2 blocks.
    n_cap = tn
    if Bp // tm == 1 and Np >= 2 * 128:
        n_cap = min(n_cap, max(128, (Np // 2 // 128) * 128))
    tn = _pick_tile(Np, 128, n_cap)

    # Only the cheap (batch-sized) side gets padded; padded K rows of w_t are zero.
    x_p = jnp.pad(x, ((0, Bp - B), (0, Kp - in_f))).astype(compute_dtype)
    bias_row = jnp.pad(bias.astype(jnp.float32), (0, Np - out_f)).reshape(1, Np)

    grid = (Bp // tm, Np // tn, Kp // tk)

    cb = jnp.dtype(compute_dtype).itemsize
    ob = jnp.dtype(out_dtype).itemsize
    est_vmem = 2 * (tm * tk * cb + tk * tn * cb + tm * tn * ob + tn * 4) + tm * tn * 4
    cost = pl.CostEstimate(
        flops=int(2 * Bp * Np * Kp), transcendentals=0,
        bytes_accessed=int(Bp * Kp * cb + (Bp // tm) * Kp * Np * cb
                           + Np * 4 + Bp * Np * ob))

    out = pl.pallas_call(
        _noisy_matmul_kernel,
        out_shape=jax.ShapeDtypeStruct((Bp, Np), out_dtype),
        grid_spec=pltpu.PrefetchScalarGridSpec(
            num_scalar_prefetch=0,
            grid=grid,
            in_specs=[
                pl.BlockSpec((tm, tk), lambda i, j, k: (i, k)),   # x (compute dtype)
                pl.BlockSpec((tk, tn), lambda i, j, k: (k, j)),   # fused noisy weight^T
                pl.BlockSpec((1, tn), lambda i, j, k: (0, j)),    # fused bias (f32)
            ],
            out_specs=pl.BlockSpec((tm, tn), lambda i, j, k: (i, j)),
            scratch_shapes=[pltpu.VMEM((tm, tn), jnp.float32)],
        ),
        compiler_params=pltpu.CompilerParams(
            dimension_semantics=("parallel", "parallel", "arbitrary"),
            vmem_limit_bytes=int(min(max(2 * est_vmem + (4 << 20), 16 << 20), 64 << 20))),
        cost_estimate=cost,
    )(x_p, w_t, bias_row)

    return out[:B, :out_f]


def noisy_linear(x, weight_mu, weight_sigma, weight_epsilon,
                 bias_mu, bias_sigma, bias_epsilon, *,
                 compute_dtype=jnp.bfloat16, tm=512, tn=512, tk=1024):
    """Training-mode NoisyLinear forward.

    Callers that reuse the same noise sample across multiple forwards should call
    fuse_noisy_weight(...) once and noisy_linear_matmul(...) per forward.
    """
    out_f = weight_mu.shape[0]
    w_t = fuse_noisy_weight(weight_mu, weight_sigma, weight_epsilon,
                            compute_dtype=compute_dtype)
    # Bias fused in f32 on the wrapper side (tiny vector; keeps small-sigma noise exact).
    bias = (bias_mu.astype(jnp.float32)
            + bias_sigma.astype(jnp.float32) * bias_epsilon.astype(jnp.float32))
    return noisy_linear_matmul(x, w_t, bias, out_f,
                               compute_dtype=compute_dtype, tm=tm, tn=tn, tk=tk)


# --------------------------------------------------------------------- param init (spec)
def init_noisy_linear_params(key, in_features, out_features, sigma_init=0.017):
    """Deterministic re-implementation of reset_parameters() + reset_noise()."""
    k_wmu, k_bmu, k_weps, k_beps = jax.random.split(key, 4)
    mu_range = 1.0 / math.sqrt(in_features)
    weight_mu = jax.random.uniform(
        k_wmu, (out_features, in_features), jnp.float32, -mu_range, mu_range)
    weight_sigma = jnp.full((out_features, in_features), sigma_init, jnp.float32)
    weight_epsilon = jax.random.normal(k_weps, (out_features, in_features), jnp.float32)
    bias_mu = jax.random.uniform(
        k_bmu, (out_features,), jnp.float32, -mu_range, mu_range)
    bias_sigma = jnp.full((out_features,), sigma_init, jnp.float32)
    bias_epsilon = jax.random.normal(k_beps, (out_features,), jnp.float32)
    return (weight_mu, weight_sigma, weight_epsilon,
            bias_mu, bias_sigma, bias_epsilon)


if __name__ == "__main__":
    key = jax.random.PRNGKey(0)
    k_params, k_x = jax.random.split(key)

    batch, in_features, out_features = 8, 128, 128
    params = init_noisy_linear_params(k_params, in_features, out_features)
    x = jax.random.normal(k_x, (batch, in_features), jnp.float32)

    out = jax.jit(noisy_linear)(x, *params)
    out = jax.block_until_ready(out)
    assert out.shape == (batch, out_features)

    # Reference matching the kernel's numerics (bf16 operands, f32 accumulate/bias).
    wmu, wsig, weps, bmu, bsig, beps = params
    w = wmu + wsig * weps
    b = bmu + bsig * beps
    ref_bf16 = (jnp.dot(x.astype(jnp.bfloat16), w.T.astype(jnp.bfloat16),
                        preferred_element_type=jnp.float32) + b).astype(x.dtype)
    assert jnp.allclose(out, ref_bf16, atol=1e-3, rtol=1e-3), (
        float(jnp.max(jnp.abs(out - ref_bf16))))

    # Coarse check against the pure-f32 reference (bf16 matmul tolerance).
    ref_f32 = x @ w.T + b
    assert jnp.allclose(out, ref_f32, atol=5e-2, rtol=5e-2), (
        float(jnp.max(jnp.abs(out - ref_f32))))

    print("KERNEL_OK")
</pallas_src>

<mosaic_0001>
module attributes {stable_mosaic.version = 11 : i64} {
  func.func @_noisy_matmul_kernel(%arg0: i32, %arg1: i32, %arg2: i32, %arg3: memref<8x128xbf16, #tpu.memory_space<vmem>>, %arg4: memref<128x128xbf16, #tpu.memory_space<vmem>>, %arg5: memref<1x128xf32, #tpu.memory_space<vmem>>, %arg6: memref<8x128xf32, #tpu.memory_space<vmem>>, %arg7: memref<8x128xf32, #tpu.memory_space<vmem>>) attributes {dimension_semantics = [#tpu.dimension_semantics<parallel>, #tpu.dimension_semantics<parallel>, #tpu.dimension_semantics<arbitrary>], iteration_bounds = array<i64: 1, 1, 1>, scalar_prefetch = 0 : i64, scratch_operands = 1 : i64, tpu.core_type = #tpu.core_type<tc>, window_params = [{transform_indices = @transform_0, window_bounds = array<i64: 8, 128>}, {transform_indices = @transform_1, window_bounds = array<i64: 128, 128>}, {transform_indices = @transform_2, window_bounds = array<i64: 1, 128>}, {transform_indices = @transform_3, window_bounds = array<i64: 8, 128>}]} {
    %c0_i32 = arith.constant 0 : i32
    %0 = arith.cmpi eq, %arg2, %c0_i32 : i32
    %1 = arith.extui %0 : i1 to i32
    %c0_i32_0 = arith.constant 0 : i32
    %2 = arith.cmpi ne, %1, %c0_i32_0 : i32
    scf.if %2 {
      %cst_10 = arith.constant 0.000000e+00 : f32
      %12 = vector.broadcast %cst_10 : f32 to vector<8x128xf32>
      %c0_11 = arith.constant 0 : index
      %c0_12 = arith.constant 0 : index
      %13 = vector.load %arg7[%c0_11, %c0_12] : memref<8x128xf32, #tpu.memory_space<vmem>>, vector<8x128xf32>
      tpu.vector_store %arg7[%c0_11, %c0_12], %12 {strides = array<i32>} : memref<8x128xf32, #tpu.memory_space<vmem>>, vector<8x128xf32>,
    } else {
    }
    %c0 = arith.constant 0 : index
    %c0_1 = arith.constant 0 : index
    %3 = vector.load %arg7[%c0, %c0_1] : memref<8x128xf32, #tpu.memory_space<vmem>>, vector<8x128xf32>
    %c0_2 = arith.constant 0 : index
    %c0_3 = arith.constant 0 : index
    %4 = vector.load %arg3[%c0_2, %c0_3] : memref<8x128xbf16, #tpu.memory_space<vmem>>, vector<8x128xbf16>
    %c0_4 = arith.constant 0 : index
    %c0_5 = arith.constant 0 : index
    %5 = vector.load %arg4[%c0_4, %c0_5] : memref<128x128xbf16, #tpu.memory_space<vmem>>, vector<128x128xbf16>
    %cst = arith.constant dense<0.000000e+00> : vector<8x128xf32>
    %6 = tpu.matmul %4, %5, %cst {dimension_numbers = #tpu.dot_dimension_numbers<[1], [0], [0], [1], [0, 0, 1, 1], [], []>} : vector<8x128xbf16>, vector<128x128xbf16>, vector<8x128xf32> -> vector<8x128xf32>
    %7 = arith.addf %3, %6 : vector<8x128xf32>
    %c0_6 = arith.constant 0 : index
    %c0_7 = arith.constant 0 : index
    %8 = vector.load %arg7[%c0_6, %c0_7] : memref<8x128xf32, #tpu.memory_space<vmem>>, vector<8x128xf32>
    tpu.vector_store %arg7[%c0_6, %c0_7], %7 {strides = array<i32>} : memref<8x128xf32, #tpu.memory_space<vmem>>, vector<8x128xf32>,
    %c0_i32_8 = arith.constant 0 : i32
    %9 = arith.cmpi eq, %arg2, %c0_i32_8 : i32
    %10 = arith.extui %9 : i1 to i32
    %c0_i32_9 = arith.constant 0 : i32
    %11 = arith.cmpi ne, %10, %c0_i32_9 : i32
    scf.if %11 {
      %c0_10 = arith.constant 0 : index
      %c0_11 = arith.constant 0 : index
      %12 = vector.load %arg7[%c0_10, %c0_11] : memref<8x128xf32, #tpu.memory_space<vmem>>, vector<8x128xf32>
      %c0_12 = arith.constant 0 : index
      %c0_13 = arith.constant 0 : index
      %13 = vector.load %arg5[%c0_12, %c0_13] : memref<1x128xf32, #tpu.memory_space<vmem>>, vector<1x128xf32>
      %14 = vector.broadcast %13 : vector<1x128xf32> to vector<8x128xf32>
      %15 = arith.addf %12, %14 : vector<8x128xf32>
      %c0_14 = arith.constant 0 : index
      %c0_15 = arith.constant 0 : index
      %16 = vector.load %arg6[%c0_14, %c0_15] : memref<8x128xf32, #tpu.memory_space<vmem>>, vector<8x128xf32>
      tpu.vector_store %arg6[%c0_14, %c0_15], %15 {strides = array<i32>} : memref<8x128xf32, #tpu.memory_space<vmem>>, vector<8x128xf32>,
    } else {
    }
    return
  }
  func.func @transform_0(%arg0: i32, %arg1: i32, %arg2: i32) -> (i32, i32) {
    %c0_i32 = arith.constant 0 : i32
    return %arg0, %arg2 : i32, i32
  }
  func.func @transform_1(%arg0: i32, %arg1: i32, %arg2: i32) -> (i32, i32) {
    %c0_i32 = arith.constant 0 : i32
    return %arg2, %arg1 : i32, i32
  }
  func.func @transform_2(%arg0: i32, %arg1: i32, %arg2: i32) -> (i32, i32) {
    %c0_i32 = arith.constant 0 : i32
    %c0_i32_0 = arith.constant 0 : i32
    return %c0_i32, %arg1 : i32, i32
  }
  func.func @transform_3(%arg0: i32, %arg1: i32, %arg2: i32) -> (i32, i32) {
    %c0_i32 = arith.constant 0 : i32
    return %arg0, %arg1 : i32, i32
  }
}

module attributes {stable_mosaic.version = 11 : i64} {
  func.func @_fuse_weight_kernel(%arg0: i32, %arg1: i32, %arg2: memref<128x128xf32, #tpu.memory_space<vmem>>, %arg3: memref<128x128xf32, #tpu.memory_space<vmem>>, %arg4: memref<128x128xf32, #tpu.memory_space<vmem>>, %arg5: memref<128x128xbf16, #tpu.memory_space<vmem>>) attributes {dimension_semantics = [#tpu.dimension_semantics<parallel>, #tpu.dimension_semantics<parallel>], iteration_bounds = array<i64: 1, 1>, scalar_prefetch = 0 : i64, scratch_operands = 0 : i64, tpu.core_type = #tpu.core_type<tc>, window_params = [{transform_indices = @transform_0, window_bounds = array<i64: 128, 128>}, {transform_indices = @transform_1, window_bounds = array<i64: 128, 128>}, {transform_indices = @transform_2, window_bounds = array<i64: 128, 128>}, {transform_indices = @transform_3, window_bounds = array<i64: 128, 128>}]} {
    %c0 = arith.constant 0 : index
    %c0_0 = arith.constant 0 : index
    %0 = vector.load %arg2[%c0, %c0_0] : memref<128x128xf32, #tpu.memory_space<vmem>>, vector<128x128xf32>
    %c0_1 = arith.constant 0 : index
    %c0_2 = arith.constant 0 : index
    %1 = vector.load %arg3[%c0_1, %c0_2] : memref<128x128xf32, #tpu.memory_space<vmem>>, vector<128x128xf32>
    %c0_3 = arith.constant 0 : index
    %c0_4 = arith.constant 0 : index
    %2 = vector.load %arg4[%c0_3, %c0_4] : memref<128x128xf32, #tpu.memory_space<vmem>>, vector<128x128xf32>
    %3 = arith.mulf %1, %2 : vector<128x128xf32>
    %4 = arith.addf %0, %3 : vector<128x128xf32>
    %5 = tpu.transpose %4, [1, 0] : vector<128x128xf32> -> vector<128x128xf32>
    %6 = arith.truncf %5 : vector<128x128xf32> to vector<128x128xbf16>
    %c0_5 = arith.constant 0 : index
    %c0_6 = arith.constant 0 : index
    %7 = vector.load %arg5[%c0_5, %c0_6] : memref<128x128xbf16, #tpu.memory_space<vmem>>, vector<128x128xbf16>
    tpu.vector_store %arg5[%c0_5, %c0_6], %6 {strides = array<i32>} : memref<128x128xbf16, #tpu.memory_space<vmem>>, vector<128x128xbf16>,
    return
  }
  func.func @transform_0(%arg0: i32, %arg1: i32) -> (i32, i32) {
    %c0_i32 = arith.constant 0 : i32
    return %arg0, %arg1 : i32, i32
  }
  func.func @transform_1(%arg0: i32, %arg1: i32) -> (i32, i32) {
    %c0_i32 = arith.constant 0 : i32
    return %arg0, %arg1 : i32, i32
  }
  func.func @transform_2(%arg0: i32, %arg1: i32) -> (i32, i32) {
    %c0_i32 = arith.constant 0 : i32
    return %arg0, %arg1 : i32, i32
  }
  func.func @transform_3(%arg0: i32, %arg1: i32) -> (i32, i32) {
    %c0_i32 = arith.constant 0 : i32
    return %arg1, %arg0 : i32, i32
  }
}

</mosaic_0001>

<bundles_post_ra>
// kernel: noisy_linear.3
= control target key start
LH: loop header
LB: loop body
LE: loop exit
PB: predicated region body
PF: predicated region fallthrough
CT: control target
= control target key end

     0   :  { %v227_v1 = vmov 0.0   ;;  %vm228_vm0 = vmmov 0   ;;  %s283_s0 = inlined_call_operand.vmem [shape: bf16[8,128], index: 0, kind: input, shape index: {}]   ;;  %s284_s1 = inlined_call_operand.vmem [shape: bf16[128,128], index: 1, kind: input, shape index: {}]   ;;  %s285_s2 = inlined_call_operand.vmem [shape: f32[1,128], index: 2, kind: input, shape index: {}]   ;;  %s286_s3 = inlined_call_operand.hbm [shape: f32[8,128], index: 3, kind: output, shape index: {}]  }
   0x1   :  { %v197_v0 = vld [vmem:[%s284_s1 + $0x38] sm:$0xff]   ;;  %174 = vmatprep.subr.bf16.mxu0 %v227_v1  ;;  %v198_v2 = vld [vmem:[%s284_s1 + $0x30] sm:$0xff]   ;;  %190 = vmatprep.mubr.msk.bf16.mxu0 %vm228_vm0, %v227_v1  ;;  %v199_v3 = vld [vmem:[%s284_s1 + $0x28] sm:$0xff]  }
   0x2   :  { %175 = vmatpush3.bf16.msra.mxu0 %v197_v0 }
   0x3   :  { %176 = vmatprep.subr.bf16.mxu0 %v227_v1 }
   0x6   :  { %177 = vmatpush3.bf16.msra.mxu0 %v198_v2 }
   0x7   :  { %178 = vmatprep.subr.bf16.mxu0 %v227_v1 }
   0x8   :  { %8 = vsyncpa [#allocation4], 0  ;;  %v200_v4 = vld [vmem:[%s284_s1 + $0x20] sm:$0xff]   ;;  %v201_v5 = vld [vmem:[%s284_s1 + $0x18] sm:$0xff]   ;;  %s229_s5 = smov [#allocation3]  }
   0x9   :  { %v202_v6 = vld [vmem:[%s284_s1 + $0x10] sm:$0xff]   ;;  %v203_v7 = vld [vmem:[%s284_s1 + $0x8] sm:$0xff]   ;;  %v204_v8 = vld [vmem:[%s284_s1] sm:$0xff]   ;;  %s148_s6 = sshll.u32 %s229_s5, 4  ;;  %s149_s6 = int_to_ptr.vmem [resolvable:$true] %s148_s6 }
   0xa   :  { %179 = vmatpush3.bf16.msra.mxu0 %v199_v3  ;;  %v22_v9 = vld [vmem:[%s283_s0] sm:$0xf]  ;;  %s205_s1 = scalar_lea.vmem %s149_s6, 128  ;;  %p210_p1 = scmp.lt.s32.totalorder %s149_s6, %s149_s6 }
   0xb   :  { %180 = vmatprep.subr.bf16.mxu0 %v227_v1  ;;  %v164_v10 = vld [vmem:[%s285_s2] ss:$0 sm:$0xff]  ;;  %p206_p0 = scmp.ne.s32.totalorder %s149_s6, %s205_s1  ;;  %p211_p2 = scmp.lt.s32.totalorder %s205_s1, %s205_s1 }
   0xd   :  { %p212_p3 = por %p211_p2, %p210_p1 }
   0xe   :  { %181 = vmatpush3.bf16.msra.mxu0 %v200_v4 }
   0xf   :  { %182 = vmatprep.subr.bf16.mxu0 %v227_v1  ;;  %p213_p4 = pnand %p212_p3, %p206_p0 }
  0x12   :  { %183 = vmatpush3.bf16.msra.mxu0 %v201_v5 }
  0x13   :  { %184 = vmatprep.subr.bf16.mxu0 %v227_v1 }
  0x16   :  { %185 = vmatpush3.bf16.msra.mxu0 %v202_v6 }
  0x17   :  { %186 = vmatprep.subr.bf16.mxu0 %v227_v1 }
  0x1a   :  { %187 = vmatpush3.bf16.msra.mxu0 %v203_v7 }
  0x1b   :  { %188 = vmatprep.subr.bf16.mxu0 %v227_v1 }
  0x1e   :  { %189 = vmatpush3.bf16.msra.mxu0 %v204_v8 }
  0x21   :  { %191 = vmatmul.mubr.bf16.vlgmr.msra.gmra.mxu0 %v22_v9 }
  0xe1   :  { %v121_v11 = vpop.f32.mrf.mxu0 }
  0xe2   :  { %v140_v12 = vadd.f32 %v164_v10, %v121_v11 }
  0xe3   :  { %v192_v13 = vpop.f32.mrf.mxu0 }
  0xe4   :  { %141 = vst [vmem:[#allocation3] sm:$0xff] %v140_v12 }
  0xe5   :  { %v124_v14 = vpop.f32.mrf.mxu0 }
  0xe6   :  { %216 = shalt.err (!%p213_p4)
}
  0xe7   :  { %151 = dma.vmem_to_hbm [thread:$0]  %s149_s6, 128, %s286_s3, [#allocation4]   ;;  %v193_v15 = vpop.f32.mrf.mxu0 }
  0xe8   :  { %225 = dma.done.wait [#allocation4], 128  }
  0xe9   :  { %226 = vsyncadd [#allocation4], 4294967168 }
  0xea   :  { %155 = vsyncpa [#allocation4], 1 }

// kernel: noisy_linear.2
= control target key start
LH: loop header
LB: loop body
LE: loop exit
PB: predicated region body
PF: predicated region fallthrough
CT: control target
= control target key end

     0   :  { %8 = vsyncpa [#allocation3], 0  ;;  %s459_s0 = inlined_call_operand.hbm [shape: f32[128,128], index: 0, kind: input, shape index: {}]   ;;  %s460_s1 = inlined_call_operand.hbm [shape: f32[128,128], index: 1, kind: input, shape index: {}]   ;;  %s461_s2 = inlined_call_operand.hbm [shape: f32[128,128], index: 2, kind: input, shape index: {}]   ;;  %s462_s3 = inlined_call_operand.vmem [shape: bf16[128,128], index: 3, kind: output, shape index: {}]  }
   0x1   :  { %9 = vsyncpa [#allocation5], 0  ;;  %s401_s12 = smov [#allocation4]   ;;  %s402_s14 = smov [#allocation2]  }
   0x2   :  { %s27_s13 = sshll.u32 %s401_s12, 4  ;;  %s15_s15 = sshll.u32 %s402_s14, 4  ;;  %s28_s13 = int_to_ptr.vmem [resolvable:$true] %s27_s13  ;;  %s16_s15 = int_to_ptr.vmem [resolvable:$true] %s15_s15 }
   0x3   :  { %s345_s16 = scalar_lea.vmem %s28_s13, 2048  ;;  %p350_p1 = scmp.lt.s32.totalorder %s28_s13, %s28_s13 }
   0x4   :  { %p346_p0 = scmp.ne.s32.totalorder %s28_s13, %s345_s16  ;;  %p351_p2 = scmp.lt.s32.totalorder %s345_s16, %s345_s16 }
   0x6   :  { %p352_p3 = por %p351_p2, %p350_p1 }
   0x8   :  { %p353_p4 = pnand %p352_p3, %p346_p0 }
   0xa   :  { %356 = shalt.err (!%p353_p4)
}
   0xb   :  { %s403_s17 = smov 128   ;;  %s404_s18 = smov 8  }
   0xc   :  { %33 = dma.hbm_to_vmem [thread:$0]  %s460_s1, 2048, %s28_s13, [#allocation5], %s403_s17, %s403_s17, %s404_s18  }
   0xd   :  { %s365_s21 = scalar_lea.vmem %s16_s15, 2048  ;;  %p370_p6 = scmp.lt.s32.totalorder %s16_s15, %s16_s15 }
   0xe   :  { %p366_p5 = scmp.ne.s32.totalorder %s16_s15, %s365_s21  ;;  %p371_p7 = scmp.lt.s32.totalorder %s365_s21, %s365_s21 }
  0x10   :  { %p372_p8 = por %p371_p7, %p370_p6 }
  0x12   :  { %p373_p9 = pnand %p372_p8, %p366_p5 }
  0x14   :  { %376 = shalt.err (!%p373_p9)
}
  0x15   :  { %21 = dma.hbm_to_vmem [thread:$0]  %s459_s0, 2048, %s16_s15, [#allocation3], %s403_s17, %s403_s17, %s404_s18  }
  0x16   :  { %s405_s24 = smov [#allocation6]  }
  0x17   :  { %s39_s25 = sshll.u32 %s405_s24, 4  ;;  %s40_s25 = int_to_ptr.vmem [resolvable:$true] %s39_s25 }
  0x18   :  { %s385_s26 = scalar_lea.vmem %s40_s25, 2048  ;;  %p390_p11 = scmp.lt.s32.totalorder %s40_s25, %s40_s25 }
  0x19   :  { %p386_p10 = scmp.ne.s32.totalorder %s40_s25, %s385_s26  ;;  %p391_p12 = scmp.lt.s32.totalorder %s385_s26, %s385_s26 }
  0x1b   :  { %p392_p13 = por %p391_p12, %p390_p11 }
  0x1d   :  { %p393_p0 = pnand %p392_p13, %p386_p10 }
  0x1f   :  { %396 = shalt.err (!%p393_p0)
}
  0x20   :  { %45 = dma.hbm_to_vmem [thread:$0]  %s461_s2, 2048, %s40_s25, [#allocation5], %s403_s17, %s403_s17, %s404_s18  }
  0x21   :  { %397 = dma.done.wait [#allocation3], 2048  }
  0x22   :  { %398 = vsyncadd [#allocation3], 4294965248 }
  0x23   :  { %399 = dma.done.wait [#allocation5], 4096  }
  0x24   :  { %400 = vsyncadd [#allocation5], 4294963200  ;;  %v55_v0 = vld [vmem:[#allocation2] sm:$0xff]  ;;  %v72_v4 = vld [vmem:[#allocation4 + $0x8] sm:$0xff] }
  0x25   :  { %v71_v1 = vld [vmem:[#allocation4] sm:$0xff]  ;;  %v88_v5 = vld [vmem:[#allocation6 + $0x8] sm:$0xff]  ;;  %v73_v8 = vld [vmem:[#allocation4 + $0x10] sm:$0xff] }
  0x26   :  { %v87_v2 = vld [vmem:[#allocation6] sm:$0xff]  ;;  %v56_v6 = vld [vmem:[#allocation2 + $0x8] sm:$0xff]  ;;  %v104_v7 = vmul.f32 %v88_v5, %v72_v4  ;;  %v89_v9 = vld [vmem:[#allocation6 + $0x10] sm:$0xff] }
  0x27   :  { %v103_v3 = vmul.f32 %v87_v2, %v71_v1  ;;  %v105_v12 = vmul.f32 %v89_v9, %v73_v8  ;;  %v57_v13 = vld [vmem:[#allocation2 + $0x10] sm:$0xff]  ;;  %v74_v14 = vld [vmem:[#allocation4 + $0x18] sm:$0xff]  ;;  %v75_v19 = vld [vmem:[#allocation4 + $0x20] sm:$0xff] }
  0x28   :  { %v120_v11 = vadd.f32 %v104_v7, %v56_v6  ;;  %v90_v15 = vld [vmem:[#allocation6 + $0x18] sm:$0xff]  ;;  %v91_v20 = vld [vmem:[#allocation6 + $0x20] sm:$0xff]  ;;  %v76_v24 = vld [vmem:[#allocation4 + $0x28] sm:$0xff] }
  0x29   :  { %v119_v10 = vadd.f32 %v103_v3, %v55_v0  ;;  %v121_v16 = vadd.f32 %v105_v12, %v57_v13  ;;  %v106_v17 = vmul.f32 %v90_v15, %v74_v14  ;;  %v58_v18 = vld [vmem:[#allocation2 + $0x18] sm:$0xff]  ;;  %v107_v22 = vmul.f32 %v91_v20, %v75_v19  ;;  %v59_v23 = vld [vmem:[#allocation2 + $0x20] sm:$0xff]  ;;  %v92_v25 = vld [vmem:[#allocation6 + $0x28] sm:$0xff] }
  0x2a   :  { %v108_v27 = vmul.f32 %v92_v25, %v76_v24  ;;  %v60_v28 = vld [vmem:[#allocation2 + $0x28] sm:$0xff]  ;;  %v77_v29 = vld [vmem:[#allocation4 + $0x30] sm:$0xff]  ;;  %v78_v34 = vld [vmem:[#allocation4 + $0x38] sm:$0xff] }
  0x2b   :  { %135 = vxpose.xlu0.b32.start [1/16] %v119_v10, 128  ;;  %v122_v21 = vadd.f32 %v106_v17, %v58_v18  ;;  %v123_v26 = vadd.f32 %v107_v22, %v59_v23  ;;  %v93_v30 = vld [vmem:[#allocation6 + $0x30] sm:$0xff]  ;;  %v94_v35 = vld [vmem:[#allocation6 + $0x38] sm:$0xff]  ;;  %v79_v39 = vld [vmem:[#allocation4 + $0x40] sm:$0xff] }
  0x2c   :  { %v124_v31 = vadd.f32 %v108_v27, %v60_v28  ;;  %v109_v32 = vmul.f32 %v93_v30, %v77_v29  ;;  %v61_v33 = vld [vmem:[#allocation2 + $0x30] sm:$0xff]  ;;  %v110_v37 = vmul.f32 %v94_v35, %v78_v34  ;;  %v62_v38 = vld [vmem:[#allocation2 + $0x38] sm:$0xff]  ;;  %v95_v40 = vld [vmem:[#allocation6 + $0x40] sm:$0xff] }
  0x2d   :  { %v111_v42 = vmul.f32 %v95_v40, %v79_v39  ;;  %v63_v43 = vld [vmem:[#allocation2 + $0x40] sm:$0xff]  ;;  %v80_v44 = vld [vmem:[#allocation4 + $0x48] sm:$0xff]  ;;  %v81_v49 = vld [vmem:[#allocation4 + $0x50] sm:$0xff] }
  0x2e   :  { %v125_v36 = vadd.f32 %v109_v32, %v61_v33  ;;  %v126_v41 = vadd.f32 %v110_v37, %v62_v38  ;;  %v96_v45 = vld [vmem:[#allocation6 + $0x48] sm:$0xff]  ;;  %v97_v50 = vld [vmem:[#allocation6 + $0x50] sm:$0xff]  ;;  %v82_v54 = vld [vmem:[#allocation4 + $0x58] sm:$0xff] }
  0x2f   :  { %136 = vxpose.xlu0.b32.cont [2/16] %v120_v11, 128  ;;  %v127_v46 = vadd.f32 %v111_v42, %v63_v43  ;;  %v112_v47 = vmul.f32 %v96_v45, %v80_v44  ;;  %v64_v48 = vld [vmem:[#allocation2 + $0x48] sm:$0xff]  ;;  %v113_v52 = vmul.f32 %v97_v50, %v81_v49  ;;  %v65_v53 = vld [vmem:[#allocation2 + $0x50] sm:$0xff]  ;;  %v98_v55 = vld [vmem:[#allocation6 + $0x58] sm:$0xff] }
  0x30   :  { %v114_v57 = vmul.f32 %v98_v55, %v82_v54  ;;  %v66_v58 = vld [vmem:[#allocation2 + $0x58] sm:$0xff]  ;;  %v83_v59 = vld [vmem:[#allocation4 + $0x60] sm:$0xff]  ;;  %v84_v0 = vld [vmem:[#allocation4 + $0x68] sm:$0xff] }
  0x31   :  { %v128_v51 = vadd.f32 %v112_v47, %v64_v48  ;;  %v129_v56 = vadd.f32 %v113_v52, %v65_v53  ;;  %v99_v60 = vld [vmem:[#allocation6 + $0x60] sm:$0xff]  ;;  %v100_v1 = vld [vmem:[#allocation6 + $0x68] sm:$0xff]  ;;  %v85_v5 = vld [vmem:[#allocation4 + $0x70] sm:$0xff] }
  0x32   :  { %v130_v61 = vadd.f32 %v114_v57, %v66_v58  ;;  %v115_v62 = vmul.f32 %v99_v60, %v83_v59  ;;  %v67_v63 = vld [vmem:[#allocation2 + $0x60] sm:$0xff]  ;;  %v116_v3 = vmul.f32 %v100_v1, %v84_v0  ;;  %v68_v4 = vld [vmem:[#allocation2 + $0x68] sm:$0xff]  ;;  %v101_v6 = vld [vmem:[#allocation6 + $0x70] sm:$0xff] }
  0x33   :  { %137 = vxpose.xlu0.b32.cont [3/16] %v121_v16, 128  ;;  %v117_v8 = vmul.f32 %v101_v6, %v85_v5  ;;  %v69_v9 = vld [vmem:[#allocation2 + $0x70] sm:$0xff]  ;;  %v86_v10 = vld [vmem:[#allocation4 + $0x78] sm:$0xff] }
  0x34   :  { %v131_v2 = vadd.f32 %v115_v62, %v67_v63  ;;  %v132_v7 = vadd.f32 %v116_v3, %v68_v4  ;;  %v102_v11 = vld [vmem:[#allocation6 + $0x78] sm:$0xff] }
  0x35   :  { %v133_v12 = vadd.f32 %v117_v8, %v69_v9  ;;  %v118_v13 = vmul.f32 %v102_v11, %v86_v10  ;;  %v70_v14 = vld [vmem:[#allocation2 + $0x78] sm:$0xff] }
  0x37   :  { %138 = vxpose.xlu0.b32.cont [4/16] %v122_v21, 128  ;;  %v134_v15 = vadd.f32 %v118_v13, %v70_v14 }
  0x3b   :  { %139 = vxpose.xlu0.b32.cont [5/16] %v123_v26, 128 }
  0x3f   :  { %140 = vxpose.xlu0.b32.cont [6/16] %v124_v31, 128 }
  0x43   :  { %141 = vxpose.xlu0.b32.cont [7/16] %v125_v36, 128 }
  0x47   :  { %142 = vxpose.xlu0.b32.cont [8/16] %v126_v41, 128 }
  0x4b   :  { %143 = vxpose.xlu0.b32.cont [9/16] %v127_v46, 128 }
  0x4f   :  { %144 = vxpose.xlu0.b32.cont [10/16] %v128_v51, 128 }
  0x53   :  { %145 = vxpose.xlu0.b32.cont [11/16] %v129_v56, 128 }
  0x57   :  { %146 = vxpose.xlu0.b32.cont [12/16] %v130_v61, 128 }
  0x5b   :  { %147 = vxpose.xlu0.b32.cont [13/16] %v131_v2, 128 }
  0x5f   :  { %148 = vxpose.xlu0.b32.cont [14/16] %v132_v7, 128 }
  0x63   :  { %149 = vxpose.xlu0.b32.cont [15/16] %v133_v12, 128 }
  0x67   :  { %150 = vxpose.xlu0.b32.end [16/16] %v134_v15, 128 }
  0xa7   :  { %v151_v16 = vpop.trf.xlu0 }
  0xab   :  { %v152_v17 = vpop.trf.xlu0 }
  0xac   :  { %v288_v18 = vpack.c.bf16 %v152_v17, %v151_v16 }
  0xae   :  { %289 = vst [vmem:[%s462_s3] sm:$0xff] %v288_v18  }
  0xaf   :  { %v153_v19 = vpop.trf.xlu0 }
  0xb3   :  { %v154_v20 = vpop.trf.xlu0 }
  0xb4   :  { %v293_v21 = vpack.c.bf16 %v154_v20, %v153_v19 }
  0xb6   :  { %325 = vst [vmem:[%s462_s3 + $0x8] sm:$0xff] %v293_v21  }
  0xb7   :  { %v155_v22 = vpop.trf.xlu0 }
  0xbb   :  { %v156_v23 = vpop.trf.xlu0 }
  0xbc   :  { %v298_v24 = vpack.c.bf16 %v156_v23, %v155_v22 }
  0xbe   :  { %326 = vst [vmem:[%s462_s3 + $0x10] sm:$0xff] %v298_v24  }
  0xbf   :  { %v157_v25 = vpop.trf.xlu0 }
  0xc3   :  { %v158_v26 = vpop.trf.xlu0 }
  0xc4   :  { %v303_v27 = vpack.c.bf16 %v158_v26, %v157_v25 }
  0xc6   :  { %327 = vst [vmem:[%s462_s3 + $0x18] sm:$0xff] %v303_v27  }
  0xc7   :  { %v159_v28 = vpop.trf.xlu0 }
  0xcb   :  { %v160_v29 = vpop.trf.xlu0 }
  0xcc   :  { %v308_v30 = vpack.c.bf16 %v160_v29, %v159_v28 }
  0xce   :  { %328 = vst [vmem:[%s462_s3 + $0x20] sm:$0xff] %v308_v30  }
  0xcf   :  { %v161_v31 = vpop.trf.xlu0 }
  0xd3   :  { %v162_v32 = vpop.trf.xlu0 }
  0xd4   :  { %v313_v33 = vpack.c.bf16 %v162_v32, %v161_v31 }
  0xd6   :  { %329 = vst [vmem:[%s462_s3 + $0x28] sm:$0xff] %v313_v33  }
  0xd7   :  { %v163_v34 = vpop.trf.xlu0 }
  0xdb   :  { %v164_v35 = vpop.trf.xlu0 }
  0xdc   :  { %v318_v36 = vpack.c.bf16 %v164_v35, %v163_v34 }
  0xde   :  { %330 = vst [vmem:[%s462_s3 + $0x30] sm:$0xff] %v318_v36  }
  0xdf   :  { %v165_v37 = vpop.trf.xlu0 }
  0xe3   :  { %v166_v38 = vpop.trf.xlu0 }
  0xe4   :  { %v323_v39 = vpack.c.bf16 %v166_v38, %v165_v37 }
  0xe6   :  { %331 = vst [vmem:[%s462_s3 + $0x38] sm:$0xff] %v323_v39  }
  0xe7   :  { %251 = vsyncpa [#allocation3], 1 }
  0xe8   :  { %252 = vsyncpa [#allocation5], 1 }

</bundles_post_ra>
